<compile_context>
chip_gen: v7x
topology: tpu7x:2x2x1
jax: 0.10.0
libtpu: 0.0.40
codegen_flags: <defaults>
</compile_context>

<pallas_src>
import functools

import jax
import jax.numpy as jnp
from jax.experimental import pallas as pl
from jax.experimental.pallas import tpu as pltpu


def _round_up(x, m):
    return ((x + m - 1) // m) * m


def _gru_seq_kernel(x_ref, h0_ref, wx_ref, wh_ref, b_ref, o_ref, h_scr, *, hp):
    # x_ref : (1, Dp)   f32   current input row (leading time dim squeezed)
    # h0_ref: (1, Hp)   f32   initial state (VMEM-resident, constant block)
    # wx_ref: (Dp, 3Hp) bf16  columns [r | z | n_in ]   (VMEM-resident)
    # wh_ref: (Hp, 3Hp) bf16  columns [r | z | n_hid]   (VMEM-resident)
    # b_ref : (1, 4Hp)  f32   [b_ir+b_hr | b_iz+b_hz | b_in | b_hn]
    # o_ref : (1, Hp)   f32   output state for this step
    # h_scr : (1, Hp)   f32   carried state across grid steps
    t = pl.program_id(0)

    @pl.when(t == 0)
    def _():
        h_scr[...] = h0_ref[...]

    h = h_scr[...]                       # f32 carry; only matmul operand is rounded
    b = b_ref[...]

    gx = jnp.dot(x_ref[...].astype(wx_ref.dtype), wx_ref[...],
                 preferred_element_type=jnp.float32)          # (1, 3*Hp)
    gh = jnp.dot(h.astype(wh_ref.dtype), wh_ref[...],
                 preferred_element_type=jnp.float32)          # (1, 3*Hp)

    rz = jax.nn.sigmoid(gx[:, : 2 * hp] + gh[:, : 2 * hp] + b[:, : 2 * hp])
    r = rz[:, :hp]
    z = rz[:, hp:]
    n = jnp.tanh(gx[:, 2 * hp :] + b[:, 2 * hp : 3 * hp]
                 + r * (gh[:, 2 * hp :] + b[:, 3 * hp :]))
    h_new = (1.0 - z) * n + z * h

    h_scr[...] = h_new
    o_ref[...] = h_new.astype(o_ref.dtype)


def init_gru_params(key, dim_in, dim_hid):
    """Deterministic init matching torch.nn.GRU parameter shapes/ranges.

    PyTorch stores weight_ih_l0 as (3*H, dim_in), gate order [r, z, n]; here we
    keep the transpose, stacked per gate: wih (3, dim_in, H), whh (3, H, H),
    biases (3, 1, H).  Uniform(-1/sqrt(H), 1/sqrt(H)) like the PyTorch default.
    """
    k = 1.0 / jnp.sqrt(jnp.float32(dim_hid))
    k1, k2, k3, k4 = jax.random.split(key, 4)
    wih = jax.random.uniform(k1, (3, dim_in, dim_hid), jnp.float32, -k, k)
    whh = jax.random.uniform(k2, (3, dim_hid, dim_hid), jnp.float32, -k, k)
    bih = jax.random.uniform(k3, (3, 1, dim_hid), jnp.float32, -k, k)
    bhh = jax.random.uniform(k4, (3, 1, dim_hid), jnp.float32, -k, k)
    return wih, whh, bih, bhh


def pack_gru_params(params, dim_in, dim_hid, *, weight_dtype=jnp.bfloat16):
    """Pack per-gate GRU params into zero-free W_x / W_h / bias tensors."""
    wih, whh, bih, bhh = params
    hp = _round_up(dim_hid, 128)   # lane-dense hidden width
    dp = _round_up(dim_in, 16)     # bf16 sublane packing = 16 rows

    pad_cols = lambda w: jnp.pad(w, ((0, 0), (0, hp - dim_hid)))   # (K, H) -> (K, Hp)

    # W_x: (Dp, 3*Hp), columns [r | z | n_in]
    w_x = jnp.concatenate([pad_cols(wih[0]), pad_cols(wih[1]), pad_cols(wih[2])], axis=1)
    w_x = jnp.pad(w_x, ((0, dp - dim_in), (0, 0))).astype(weight_dtype)

    # W_h: (Hp, 3*Hp), columns [r | z | n_hid]
    w_h = jnp.concatenate([pad_cols(whh[0]), pad_cols(whh[1]), pad_cols(whh[2])], axis=1)
    w_h = jnp.pad(w_h, ((0, hp - dim_hid), (0, 0))).astype(weight_dtype)

    pad_b = lambda b: jnp.pad(b, ((0, 0), (0, hp - dim_hid)))
    b_packed = jnp.concatenate(
        [pad_b(bih[0] + bhh[0]),      # r: biases pre-summed
         pad_b(bih[1] + bhh[1]),      # z: biases pre-summed
         pad_b(bih[2]),               # n: input bias
         pad_b(bhh[2])],              # n: hidden bias (stays inside r*(...))
        axis=1).astype(jnp.float32)   # (1, 4*Hp)
    return w_x, w_h, b_packed, hp, dp


def gru_scan(x_seq, packed, dim_in, dim_hid, h0=None):
    """Run T GRU steps in ONE pallas_call (weights VMEM-resident across steps).

    x_seq: (T, dim_in), h0: (dim_hid,) or None.  Returns all states (T, dim_hid).
    """
    w_x, w_h, b_packed, hp, dp = packed
    t_len = x_seq.shape[0]
    if h0 is None:
        h0 = jnp.zeros((dim_hid,), jnp.float32)

    x_pad = jnp.zeros((t_len, 1, dp), jnp.float32).at[:, 0, :dim_in].set(
        x_seq.astype(jnp.float32))
    h0_row = jnp.zeros((1, hp), jnp.float32).at[0, :dim_hid].set(h0.astype(jnp.float32))

    kernel = functools.partial(_gru_seq_kernel, hp=hp)

    out = pl.pallas_call(
        kernel,
        out_shape=jax.ShapeDtypeStruct((t_len, 1, hp), jnp.float32),
        grid=(t_len,),
        in_specs=[
            pl.BlockSpec((None, 1, dp), lambda t: (t, 0, 0)),   # x_t streamed per step
            pl.BlockSpec((1, hp), lambda t: (0, 0)),            # h0 (resident)
            pl.BlockSpec((dp, 3 * hp), lambda t: (0, 0)),       # W_x (resident)
            pl.BlockSpec((hp, 3 * hp), lambda t: (0, 0)),       # W_h (resident)
            pl.BlockSpec((1, 4 * hp), lambda t: (0, 0)),        # biases (resident)
        ],
        out_specs=pl.BlockSpec((None, 1, hp), lambda t: (t, 0, 0)),
        scratch_shapes=[pltpu.VMEM((1, hp), jnp.float32)],      # carried h
        compiler_params=pltpu.CompilerParams(
            dimension_semantics=("arbitrary",)),                 # steps are sequential
    )(x_pad, h0_row, w_x, w_h, b_packed)

    return out[:, 0, :dim_hid]   # (T, dim_hid)


def simple_gru_forward(x, packed, dim_in, dim_hid, h=None):
    """Single GRU step matching SimpleGRU.forward. x: (dim_in,) -> (dim_hid,)."""
    return gru_scan(x[None, :], packed, dim_in, dim_hid, h0=h)[-1]


# ---------------------------------------------------------------------------
# References
# ---------------------------------------------------------------------------
def _gru_ref_f32(x, params, h):
    """Pure-JAX f32 reference of the torch.nn.GRU step."""
    wih, whh, bih, bhh = params
    gi = [x @ wih[g] + bih[g, 0] for g in range(3)]
    gh = [h @ whh[g] + bhh[g, 0] for g in range(3)]
    r = jax.nn.sigmoid(gi[0] + gh[0])
    z = jax.nn.sigmoid(gi[1] + gh[1])
    n = jnp.tanh(gi[2] + r * gh[2])
    return (1.0 - z) * n + z * h


def _gru_ref_bf16(x, params, h):
    """Reference mirroring the kernel's bf16 MXU operands / f32 gate math."""
    wih, whh, bih, bhh = params
    rd = lambda a: a.astype(jnp.bfloat16).astype(jnp.float32)
    xb, hb = rd(x), rd(h)
    gi = [xb @ rd(wih[g]) + bih[g, 0] for g in range(3)]
    gh = [hb @ rd(whh[g]) + bhh[g, 0] for g in range(3)]
    r = jax.nn.sigmoid(gi[0] + gh[0])
    z = jax.nn.sigmoid(gi[1] + gh[1])
    n = jnp.tanh(gi[2] + r * gh[2])
    return (1.0 - z) * n + z * h   # blend uses full-precision h, like the kernel


def _gru_ref_seq(x_seq, params, h0, ref_step):
    hs = []
    h = h0
    for t in range(x_seq.shape[0]):
        h = ref_step(x_seq[t], params, h)
        hs.append(h)
    return jnp.stack(hs, axis=0)


if __name__ == "__main__":
    dim_in, dim_hid, seq_len = 16, 32, 8

    key = jax.random.PRNGKey(0)
    kp, kx, kh, ks = jax.random.split(key, 4)
    params = init_gru_params(kp, dim_in, dim_hid)
    packed = pack_gru_params(params, dim_in, dim_hid)

    x = jax.random.normal(kx, (dim_in,), jnp.float32)
    h0 = jax.random.normal(kh, (dim_hid,), jnp.float32)
    x_seq = jax.random.normal(ks, (seq_len, dim_in), jnp.float32)

    # case 1: single step, h=None (zero initial state), as in SimpleGRU.forward default
    h_next_none = simple_gru_forward(x, packed, dim_in, dim_hid, h=None)
    # case 2: single step, explicit h
    h_next = simple_gru_forward(x, packed, dim_in, dim_hid, h=h0)
    # case 3: whole sequence in one kernel call (weights VMEM-resident)
    h_seq = gru_scan(x_seq, packed, dim_in, dim_hid, h0=h0)

    jax.block_until_ready(h_next_none)
    jax.block_until_ready(h_next)
    jax.block_until_ready(h_seq)

    assert h_next_none.shape == (dim_hid,)
    assert h_next.shape == (dim_hid,)
    assert h_seq.shape == (seq_len, dim_hid)

    zeros_h = jnp.zeros((dim_hid,), jnp.float32)

    # Tight checks vs. a reference that uses the same bf16-rounded matmul operands.
    assert jnp.allclose(h_next_none, _gru_ref_bf16(x, params, zeros_h), atol=1e-4)
    assert jnp.allclose(h_next, _gru_ref_bf16(x, params, h0), atol=1e-4)
    assert jnp.allclose(h_seq, _gru_ref_seq(x_seq, params, h0, _gru_ref_bf16), atol=1e-3)

    # Loose checks vs. the full-f32 torch-semantics reference (bf16 weight rounding).
    assert jnp.allclose(h_next_none, _gru_ref_f32(x, params, zeros_h), atol=2e-2)
    assert jnp.allclose(h_next, _gru_ref_f32(x, params, h0), atol=2e-2)
    assert jnp.allclose(h_seq, _gru_ref_seq(x_seq, params, h0, _gru_ref_f32), atol=5e-2)

    print("KERNEL_OK")
</pallas_src>

<mosaic_0001>
module attributes {stable_mosaic.version = 11 : i64} {
  func.func @_gru_seq_kernel(%arg0: i32, %arg1: memref<1x1x16xf32, #tpu.memory_space<vmem>>, %arg2: memref<1x128xf32, #tpu.memory_space<vmem>>, %arg3: memref<16x384xbf16, #tpu.memory_space<vmem>>, %arg4: memref<128x384xbf16, #tpu.memory_space<vmem>>, %arg5: memref<1x512xf32, #tpu.memory_space<vmem>>, %arg6: memref<1x1x128xf32, #tpu.memory_space<vmem>>, %arg7: memref<1x128xf32, #tpu.memory_space<vmem>>) attributes {dimension_semantics = [#tpu.dimension_semantics<arbitrary>], iteration_bounds = array<i64: 1>, scalar_prefetch = 0 : i64, scratch_operands = 1 : i64, tpu.core_type = #tpu.core_type<tc>, window_params = [{transform_indices = @transform_0, window_bounds = array<i64: 1, 1, 16>}, {pipeline_mode = #tpu.pipeline_mode<synchronous>, transform_indices = @transform_1, window_bounds = array<i64: 1, 128>}, {pipeline_mode = #tpu.pipeline_mode<synchronous>, transform_indices = @transform_2, window_bounds = array<i64: 16, 384>}, {pipeline_mode = #tpu.pipeline_mode<synchronous>, transform_indices = @transform_3, window_bounds = array<i64: 128, 384>}, {pipeline_mode = #tpu.pipeline_mode<synchronous>, transform_indices = @transform_4, window_bounds = array<i64: 1, 512>}, {transform_indices = @transform_5, window_bounds = array<i64: 1, 1, 128>}]} {
    %c0_i32 = arith.constant 0 : i32
    %0 = arith.cmpi eq, %arg0, %c0_i32 : i32
    %1 = arith.extui %0 : i1 to i32
    %c0_i32_0 = arith.constant 0 : i32
    %2 = arith.cmpi ne, %1, %c0_i32_0 : i32
    scf.if %2 {
      %c0_19 = arith.constant 0 : index
      %c0_20 = arith.constant 0 : index
      %43 = vector.load %arg2[%c0_19, %c0_20] : memref<1x128xf32, #tpu.memory_space<vmem>>, vector<1x128xf32>
      %c0_21 = arith.constant 0 : index
      %c0_22 = arith.constant 0 : index
      %44 = vector.load %arg7[%c0_21, %c0_22] : memref<1x128xf32, #tpu.memory_space<vmem>>, vector<1x128xf32>
      tpu.vector_store %arg7[%c0_21, %c0_22], %43 {strides = array<i32>} : memref<1x128xf32, #tpu.memory_space<vmem>>, vector<1x128xf32>,
    } else {
    }
    %c0 = arith.constant 0 : index
    %c0_1 = arith.constant 0 : index
    %3 = vector.load %arg7[%c0, %c0_1] : memref<1x128xf32, #tpu.memory_space<vmem>>, vector<1x128xf32>
    %c0_2 = arith.constant 0 : index
    %c0_3 = arith.constant 0 : index
    %4 = vector.load %arg5[%c0_2, %c0_3] : memref<1x512xf32, #tpu.memory_space<vmem>>, vector<1x512xf32>
    %c0_4 = arith.constant 0 : index
    %c0_5 = arith.constant 0 : index
    %c0_6 = arith.constant 0 : index
    %5 = vector.load %arg1[%c0_4, %c0_5, %c0_6] : memref<1x1x16xf32, #tpu.memory_space<vmem>>, vector<1x1x16xf32>
    %6 = vector.shape_cast %5 : vector<1x1x16xf32> to vector<1x16xf32>
    %7 = arith.truncf %6 : vector<1x16xf32> to vector<1x16xbf16>
    %c0_7 = arith.constant 0 : index
    %c0_8 = arith.constant 0 : index
    %8 = vector.load %arg3[%c0_7, %c0_8] : memref<16x384xbf16, #tpu.memory_space<vmem>>, vector<16x384xbf16>
    %cst = arith.constant dense<0.000000e+00> : vector<1x384xf32>
    %9 = tpu.matmul %7, %8, %cst {dimension_numbers = #tpu.dot_dimension_numbers<[1], [0], [0], [1], [0, 0, 1, 1], [], []>} : vector<1x16xbf16>, vector<16x384xbf16>, vector<1x384xf32> -> vector<1x384xf32>
    %10 = arith.truncf %3 : vector<1x128xf32> to vector<1x128xbf16>
    %c0_9 = arith.constant 0 : index
    %c0_10 = arith.constant 0 : index
    %11 = vector.load %arg4[%c0_9, %c0_10] : memref<128x384xbf16, #tpu.memory_space<vmem>>, vector<128x384xbf16>
    %cst_11 = arith.constant dense<0.000000e+00> : vector<1x384xf32>
    %12 = tpu.matmul %10, %11, %cst_11 {dimension_numbers = #tpu.dot_dimension_numbers<[1], [0], [0], [1], [0, 0, 1, 1], [], []>} : vector<1x128xbf16>, vector<128x384xbf16>, vector<1x384xf32> -> vector<1x384xf32>
    %13 = vector.extract_strided_slice %9 {offsets = [0, 0], sizes = [1, 256], strides = [1, 1]} : vector<1x384xf32> to vector<1x256xf32>
    %14 = vector.extract_strided_slice %12 {offsets = [0, 0], sizes = [1, 256], strides = [1, 1]} : vector<1x384xf32> to vector<1x256xf32>
    %15 = arith.addf %13, %14 : vector<1x256xf32>
    %16 = vector.extract_strided_slice %4 {offsets = [0, 0], sizes = [1, 256], strides = [1, 1]} : vector<1x512xf32> to vector<1x256xf32>
    %17 = arith.addf %15, %16 : vector<1x256xf32>
    %18 = arith.negf %17 : vector<1x256xf32>
    %19 = math.exp %18 : vector<1x256xf32>
    %cst_12 = arith.constant 1.000000e+00 : f32
    %20 = vector.broadcast %cst_12 : f32 to vector<1x256xf32>
    %21 = arith.addf %20, %19 : vector<1x256xf32>
    %22 = arith.divf %20, %21 : vector<1x256xf32>
    %23 = vector.extract_strided_slice %22 {offsets = [0, 0], sizes = [1, 128], strides = [1, 1]} : vector<1x256xf32> to vector<1x128xf32>
    %24 = vector.extract_strided_slice %22 {offsets = [0, 128], sizes = [1, 128], strides = [1, 1]} : vector<1x256xf32> to vector<1x128xf32>
    %25 = vector.extract_strided_slice %9 {offsets = [0, 256], sizes = [1, 128], strides = [1, 1]} : vector<1x384xf32> to vector<1x128xf32>
    %26 = vector.extract_strided_slice %4 {offsets = [0, 256], sizes = [1, 128], strides = [1, 1]} : vector<1x512xf32> to vector<1x128xf32>
    %27 = arith.addf %25, %26 : vector<1x128xf32>
    %28 = vector.extract_strided_slice %12 {offsets = [0, 256], sizes = [1, 128], strides = [1, 1]} : vector<1x384xf32> to vector<1x128xf32>
    %29 = vector.extract_strided_slice %4 {offsets = [0, 384], sizes = [1, 128], strides = [1, 1]} : vector<1x512xf32> to vector<1x128xf32>
    %30 = arith.addf %28, %29 : vector<1x128xf32>
    %31 = arith.mulf %23, %30 : vector<1x128xf32>
    %32 = arith.addf %27, %31 : vector<1x128xf32>
    %33 = math.tanh %32 : vector<1x128xf32>
    %cst_13 = arith.constant 1.000000e+00 : f32
    %34 = vector.broadcast %cst_13 : f32 to vector<1x128xf32>
    %35 = arith.subf %34, %24 : vector<1x128xf32>
    %36 = arith.mulf %35, %33 : vector<1x128xf32>
    %37 = arith.mulf %24, %3 : vector<1x128xf32>
    %38 = arith.addf %36, %37 : vector<1x128xf32>
    %c0_14 = arith.constant 0 : index
    %c0_15 = arith.constant 0 : index
    %39 = vector.load %arg7[%c0_14, %c0_15] : memref<1x128xf32, #tpu.memory_space<vmem>>, vector<1x128xf32>
    tpu.vector_store %arg7[%c0_14, %c0_15], %38 {strides = array<i32>} : memref<1x128xf32, #tpu.memory_space<vmem>>, vector<1x128xf32>,
    %c0_16 = arith.constant 0 : index
    %c0_17 = arith.constant 0 : index
    %c0_18 = arith.constant 0 : index
    %40 = vector.load %arg6[%c0_16, %c0_17, %c0_18] : memref<1x1x128xf32, #tpu.memory_space<vmem>>, vector<1x1x128xf32>
    %41 = vector.shape_cast %40 : vector<1x1x128xf32> to vector<1x128xf32>
    %42 = vector.shape_cast %38 : vector<1x128xf32> to vector<1x1x128xf32>
    tpu.vector_store %arg6[%c0_16, %c0_17, %c0_18], %42 {strides = array<i32>} : memref<1x1x128xf32, #tpu.memory_space<vmem>>, vector<1x1x128xf32>,
    return
  }
  func.func @transform_0(%arg0: i32) -> (i32, i32, i32) {
    %c0_i32 = arith.constant 0 : i32
    %c0_i32_0 = arith.constant 0 : i32
    %c0_i32_1 = arith.constant 0 : i32
    return %arg0, %c0_i32, %c0_i32_0 : i32, i32, i32
  }
  func.func @transform_1(%arg0: i32) -> (i32, i32) {
    %c0_i32 = arith.constant 0 : i32
    %c0_i32_0 = arith.constant 0 : i32
    %c0_i32_1 = arith.constant 0 : i32
    return %c0_i32, %c0_i32_0 : i32, i32
  }
  func.func @transform_2(%arg0: i32) -> (i32, i32) {
    %c0_i32 = arith.constant 0 : i32
    %c0_i32_0 = arith.constant 0 : i32
    %c0_i32_1 = arith.constant 0 : i32
    return %c0_i32, %c0_i32_0 : i32, i32
  }
  func.func @transform_3(%arg0: i32) -> (i32, i32) {
    %c0_i32 = arith.constant 0 : i32
    %c0_i32_0 = arith.constant 0 : i32
    %c0_i32_1 = arith.constant 0 : i32
    return %c0_i32, %c0_i32_0 : i32, i32
  }
  func.func @transform_4(%arg0: i32) -> (i32, i32) {
    %c0_i32 = arith.constant 0 : i32
    %c0_i32_0 = arith.constant 0 : i32
    %c0_i32_1 = arith.constant 0 : i32
    return %c0_i32, %c0_i32_0 : i32, i32
  }
  func.func @transform_5(%arg0: i32) -> (i32, i32, i32) {
    %c0_i32 = arith.constant 0 : i32
    %c0_i32_0 = arith.constant 0 : i32
    %c0_i32_1 = arith.constant 0 : i32
    return %arg0, %c0_i32, %c0_i32_0 : i32, i32, i32
  }
}

</mosaic_0001>

<bundles_post_ra>
// kernel: tpu_custom_call.1
= control target key start
LH: loop header
LB: loop body
LE: loop exit
PB: predicated region body
PF: predicated region fallthrough
CT: control target
= control target key end

     0   :  { %10 = vsyncpa [#allocation4], 0  ;;  %s818_s0 = inlined_call_operand.hbm [shape: f32[1,1,16], index: 0, kind: input, shape index: {}]   ;;  %s819_s1 = inlined_call_operand.vmem [shape: f32[1,128], index: 1, kind: input, shape index: {}]   ;;  %s820_s2 = inlined_call_operand.hbm [shape: bf16[16,384], index: 2, kind: input, shape index: {}]   ;;  %s821_s3 = inlined_call_operand.hbm [shape: bf16[128,384], index: 3, kind: input, shape index: {}]   ;;  %s822_s4 = inlined_call_operand.vmem [shape: f32[1,512], index: 4, kind: input, shape index: {}]   ;;  %s823_s5 = inlined_call_operand.hbm [shape: f32[1,1,128], index: 5, kind: output, shape index: {}]  }
   0x1   :  { %11 = vsyncpa [#allocation7], 0 }
   0x2   :  { %12 = vsyncpa [#allocation5], 0  ;;  %s699_s18 = smov [#allocation6]   ;;  %s605_s22 = scalar_lea.hbm %s820_s2, 384 }
   0x3   :  { %s30_s19 = sshll.u32 %s699_s18, 4  ;;  %p606_p0 = scmp.ne.s32.totalorder %s820_s2, %s605_s22  ;;  %s31_s19 = int_to_ptr.vmem [resolvable:$true] %s30_s19 }
   0x4   :  { %p609_p1 = scmp.lt.u32.totalorder %s605_s22, %s820_s2 }
   0x6   :  { %p611_p2 = pnand %p609_p1, %p606_p0 }
   0x8   :  { %614 = shalt.err (!%p611_p2)
}
   0x9   :  { %s615_s27 = scalar_lea.vmem %s31_s19, 384  ;;  %p620_p4 = scmp.lt.s32.totalorder %s31_s19, %s31_s19 }
   0xa   :  { %p616_p3 = scmp.ne.s32.totalorder %s31_s19, %s615_s27  ;;  %p621_p5 = scmp.lt.s32.totalorder %s615_s27, %s615_s27 }
   0xc   :  { %p622_p6 = por %p621_p5, %p620_p4 }
   0xe   :  { %p623_p7 = pnand %p622_p6, %p616_p3 }
  0x10   :  { %626 = shalt.err (!%p623_p7)
}
  0x11   :  { %s700_s28 = smov 192   ;;  %s701_s29 = smov 12  }
  0x12   :  { %36 = dma.hbm_to_vmem [thread:$0]  %s820_s2, 384, %s31_s19, [#allocation7], %s700_s28, %s700_s28, %s701_s29  }
  0x13   :  { %s702_s7 = smov [#allocation3]   ;;  %s703_s9 = smov [#allocation8]  }
  0x14   :  { %s19_s8 = sshll.u32 %s702_s7, 4  ;;  %s42_s10 = sshll.u32 %s703_s9, 4  ;;  %s20_s8 = int_to_ptr.vmem [resolvable:$true] %s19_s8  ;;  %s43_s10 = int_to_ptr.vmem [resolvable:$true] %s42_s10 }
  0x15   :  { %s627_s13 = scalar_lea.hbm %s818_s0, 16 }
  0x16   :  { %p628_p8 = scmp.ne.s32.totalorder %s818_s0, %s627_s13  ;;  %p631_p9 = scmp.lt.u32.totalorder %s627_s13, %s818_s0 }
  0x18   :  { %p633_p10 = pnand %p631_p9, %p628_p8 }
  0x1a   :  { %636 = shalt.err (!%p633_p10)
}
  0x1b   :  { %s637_s2 = scalar_lea.vmem %s20_s8, 16  ;;  %s641_s18 = scalar_lea.vmem %s20_s8, 32 }
  0x1c   :  { %p638_p11 = scmp.ne.s32.totalorder %s20_s8, %s637_s2  ;;  %p642_p12 = scmp.lt.s32.totalorder %s20_s8, %s20_s8 }
  0x1d   :  { %p643_p13 = scmp.lt.s32.totalorder %s641_s18, %s637_s2 }
  0x1f   :  { %p644_p0 = por %p643_p13, %p642_p12 }
  0x21   :  { %p645_p1 = pnand %p644_p0, %p638_p11 }
  0x23   :  { %648 = shalt.err (!%p645_p1)
}
  0x24   :  { %22 = dma.hbm_to_vmem [thread:$0]  %s818_s0, 16, %s20_s8, [#allocation4]  }
  0x25   :  { %s649_s23 = scalar_lea.hbm %s821_s3, 3072 }
  0x26   :  { %p650_p2 = scmp.ne.s32.totalorder %s821_s3, %s649_s23  ;;  %p653_p3 = scmp.lt.u32.totalorder %s649_s23, %s821_s3 }
  0x28   :  { %p655_p4 = pnand %p653_p3, %p650_p2 }
  0x2a   :  { %658 = shalt.err (!%p655_p4)
}
  0x2b   :  { %s659_s30 = scalar_lea.vmem %s43_s10, 3072  ;;  %p664_p6 = scmp.lt.s32.totalorder %s43_s10, %s43_s10 }
  0x2c   :  { %p660_p5 = scmp.ne.s32.totalorder %s43_s10, %s659_s30  ;;  %p665_p7 = scmp.lt.s32.totalorder %s659_s30, %s659_s30 }
  0x2e   :  { %p666_p8 = por %p665_p7, %p664_p6 }
  0x30   :  { %p667_p9 = pnand %p666_p8, %p660_p5 }
  0x32   :  { %670 = shalt.err (!%p667_p9)
}
  0x33   :  { %48 = dma.hbm_to_vmem [thread:$0]  %s821_s3, 3072, %s43_s10, [#allocation7], %s700_s28, %s700_s28, %s701_s29  }
  0x34   :  { %693 = dma.done.wait [#allocation4], 16  }
  0x35   :  { %694 = vsyncadd [#allocation4], 4294967280 }
  0x36   :  { %695 = dma.done.wait [#allocation7], 3456  }
  0x37   :  { %696 = vsyncadd [#allocation7], 4294963840  ;;  %v704_v0 = vmov 0   ;;  %v705_v1 = vmov 0.0   ;;  %vm706_vm0 = vmmov 0   ;;  %vm91_vm1 = vcmask 130048  }
  0x38   :  { %127 = vmatprep.mubr.bf16.mxu0 %v704_v0  ;;  %524 = vmatprep.subr.bf16.mxu1 %v705_v1  ;;  %v559_v2 = vld [vmem:[#allocation6 + $0x4] ss:$12 sps:$4 sm:$0xff]   ;;  %v561_v3 = vld [vmem:[#allocation6] ss:$12 sps:$4 sm:$0xff]   ;;  %v69_v4 = vld [vmem:[#allocation3] sm:$0x1]  ;;  %v421_v42 = vlaneseq }
  0x39   :  { %526 = vmatprep.mubr.msk.bf16.mxu1 %vm706_vm0, %v705_v1  ;;  %95 = vmatprep.subr.bf16.mxu0 %v559_v2  ;;  %v70_v5 = vpack.c.bf16 %v69_v4, %v69_v4  ;;  %v564_v6 = vld [vmem:[#allocation8 + $0x4] ss:$12 sps:$4 sm:$0xff]   ;;  %v562_v7 = vld [vmem:[#allocation8] ss:$12 sps:$4 sm:$0xff]   ;;  %v567_v8 = vld [vmem:[#allocation8 + $0x1c] ss:$12 sps:$4 sm:$0xff]  }
  0x3a   :  { %96 = vmatpush1.bf16.msra.mxu0 %v561_v3  ;;  %v565_v9 = vld [vmem:[#allocation8 + $0x18] ss:$12 sps:$4 sm:$0xff]   ;;  %v570_v10 = vld [vmem:[#allocation8 + $0x34] ss:$12 sps:$4 sm:$0xff]   ;;  %v580_v11 = vld [vmem:[#allocation6 + $0x8] ss:$12 sps:$4 sm:$0xff]  }
  0x3b   :  { %337 = vmatprep.subr.bf16.mxu0 %v564_v6  ;;  %v568_v12 = vld [vmem:[#allocation8 + $0x30] ss:$12 sps:$4 sm:$0xff]   ;;  %v573_v13 = vld [vmem:[#allocation8 + $0x4c] ss:$12 sps:$4 sm:$0xff]   ;;  %525 = vmatpush3.bf16.msra.mxu1 %v580_v11  ;;  %v584_v14 = vld [vmem:[#allocation8 + $0x8] ss:$12 sps:$4 sm:$0xff]  }
  0x3c   :  { %530 = vmatprep.subr.bf16.mxu1 %v705_v1  ;;  %v571_v15 = vld [vmem:[#allocation8 + $0x48] ss:$12 sps:$4 sm:$0xff]   ;;  %v576_v16 = vld [vmem:[#allocation8 + $0x64] ss:$12 sps:$4 sm:$0xff]   ;;  %v65_v17 = vld [vmem:[%s819_s1] sm:$0x1] }
  0x3d   :  { %485 = vmatmul.mubr.msk.bf16.vlgmr.msra.gmra.mrb[0].mxu0 %vm91_vm1, %v70_v5  ;;  %v588_v18 = vld [vmem:[#allocation8 + $0x20] ss:$12 sps:$4 sm:$0xff]   ;;  %66 = vst [vmem:[#allocation2] sm:$0x1] %v65_v17  ;;  %v579_v20 = vld [vmem:[#allocation8 + $0x7c] ss:$12 sps:$4 sm:$0xff]  }
  0x3e   :  { %338 = vmatpush1.bf16.msra.mxu0 %v562_v7  ;;  %369 = vmatprep.mubr.bf16.mxu0 %v704_v0  ;;  %v574_v19 = vld [vmem:[#allocation8 + $0x60] ss:$12 sps:$4 sm:$0xff]   ;;  %v589_v21 = vld [vmem:[#allocation8 + $0x38] ss:$12 sps:$4 sm:$0xff]   ;;  %v590_v24 = vld [vmem:[#allocation8 + $0x50] ss:$12 sps:$4 sm:$0xff]  }
  0x3f   :  { %339 = vmatprep.subr.bf16.mxu0 %v567_v8  ;;  %527 = vmatmul.mubr.msk.bf16.vlgmr.msra.gmra.mrb[0].mxu1 %vm91_vm1, %v70_v5  ;;  %v577_v22 = vld [vmem:[#allocation8 + $0x78] ss:$12 sps:$4 sm:$0xff]   ;;  %v583_v23 = vld [vmem:[#allocation8 + $0x94] ss:$12 sps:$4 sm:$0xff]   ;;  %v581_v25 = vld [vmem:[#allocation8 + $0x90] ss:$12 sps:$4 sm:$0xff]  }
  0x40   :  { %531 = vmatpush3.bf16.msra.mxu1 %v584_v14  ;;  %546 = vmatprep.mubr.msk.bf16.mxu1 %vm706_vm0, %v705_v1  ;;  %v587_v26 = vld [vmem:[#allocation8 + $0xac] ss:$12 sps:$4 sm:$0xff]   ;;  %v591_v27 = vld [vmem:[#allocation8 + $0x68] ss:$12 sps:$4 sm:$0xff]   ;;  %v594_v33 = vld [vmem:[#allocation8 + $0xb0] ss:$12 sps:$4 sm:$0xff]  }
  0x41   :  { %532 = vmatprep.subr.bf16.mxu1 %v705_v1  ;;  %v585_v28 = vld [vmem:[#allocation8 + $0xa8] ss:$12 sps:$4 sm:$0xff]   ;;  %v592_v30 = vld [vmem:[#allocation8 + $0x80] ss:$12 sps:$4 sm:$0xff]   ;;  %v593_v32 = vld [vmem:[#allocation8 + $0x98] ss:$12 sps:$4 sm:$0xff]  }
  0x42   :  { %340 = vmatpush1.bf16.msra.mxu0 %v565_v9  ;;  %v422_v43 = vshrl.u32 %v421_v42, 7  ;;  %v68_v45 = vld [vmem:[%s822_s4] sm:$0xf]  ;;  %s707_s4 = smov [#allocation9]  }
  0x43   :  { %341 = vmatprep.subr.bf16.mxu0 %v570_v10  ;;  %s472_s7 = sshll.u32 %s707_s4, 4  ;;  %s473_s7 = int_to_ptr.vmem [resolvable:$true] %s472_s7 }
  0x44   :  { %533 = vmatpush3.bf16.msra.mxu1 %v588_v18  ;;  %v795_v29 = vld [vmem:[#allocation2] sm:$0x1]  ;;  %v423_v44 = vsub.s32 0, %v422_v43  ;;  %v427_v46 = vsub.s32 1, %v422_v43  ;;  %v447_v2 = vsub.s32 2, %v422_v43  ;;  %s671_s8 = scalar_lea.vmem %s473_s7, 16  ;;  %p676_p11 = scmp.lt.s32.totalorder %s473_s7, %s473_s7 }
  0x45   :  { %534 = vmatprep.subr.bf16.mxu1 %v705_v1  ;;  %v176_v31 = vpack.c.bf16 %v795_v29, %v795_v29  ;;  %p672_p10 = scmp.ne.s32.totalorder %s473_s7, %s671_s8  ;;  %s675_s9 = scalar_lea.vmem %s473_s7, 32 }
  0x46   :  { %342 = vmatpush1.bf16.msra.mxu0 %v568_v12  ;;  %v424_v47 = vrot.slane %v68_v45, %v423_v44  ;;  %v428_v52 = vrot.slane %v68_v45, %v427_v46  ;;  %v448_v5 = vrot.slane %v68_v45, %v447_v2  ;;  %p677_p12 = scmp.lt.s32.totalorder %s675_s9, %s671_s8 }
  0x47   :  { %343 = vmatprep.subr.bf16.mxu0 %v573_v13 }
  0x48   :  { %535 = vmatpush3.bf16.msra.mxu1 %v589_v21  ;;  %p678_p13 = por %p677_p12, %p676_p11 }
  0x49   :  { %536 = vmatprep.subr.bf16.mxu1 %v705_v1 }
  0x4a   :  { %344 = vmatpush1.bf16.msra.mxu0 %v571_v15  ;;  %p679_p0 = pnand %p678_p13, %p672_p10 }
  0x4b   :  { %345 = vmatprep.subr.bf16.mxu0 %v576_v16 }
  0x4c   :  { %537 = vmatpush3.bf16.msra.mxu1 %v590_v24 }
  0x4d   :  { %538 = vmatprep.subr.bf16.mxu1 %v705_v1 }
  0x4e   :  { %346 = vmatpush1.bf16.msra.mxu0 %v574_v19 }
  0x4f   :  { %347 = vmatprep.subr.bf16.mxu0 %v579_v20 }
  0x50   :  { %539 = vmatpush3.bf16.msra.mxu1 %v591_v27 }
  0x51   :  { %540 = vmatprep.subr.bf16.mxu1 %v705_v1 }
  0x52   :  { %348 = vmatpush1.bf16.msra.mxu0 %v577_v22 }
  0x53   :  { %349 = vmatprep.subr.bf16.mxu0 %v583_v23 }
  0x54   :  { %541 = vmatpush3.bf16.msra.mxu1 %v592_v30 }
  0x55   :  { %542 = vmatprep.subr.bf16.mxu1 %v705_v1 }
  0x56   :  { %350 = vmatpush1.bf16.msra.mxu0 %v581_v25 }
  0x57   :  { %351 = vmatprep.subr.bf16.mxu0 %v587_v26 }
  0x58   :  { %543 = vmatpush3.bf16.msra.mxu1 %v593_v32 }
  0x59   :  { %544 = vmatprep.subr.bf16.mxu1 %v705_v1  ;;  %v453_v1 = vsub.s32 3, %v422_v43 }
  0x5a   :  { %352 = vmatpush1.bf16.msra.mxu0 %v585_v28 }
  0x5b   :  { %v454_v3 = vrot.slane %v68_v45, %v453_v1 }
  0x5c   :  { %545 = vmatpush3.bf16.msra.mxu1 %v594_v33 }
  0x5d   :  { %370 = vmatmul.mubr.bf16.vlgmr.msra.gmra.mrb[4].mxu0 %v176_v31 }
  0x5f   :  { %547 = vmatmul.mubr.bf16.vlgmr.msra.gmra.mrb[4].mxu1 %v176_v31 }
 0x110   :  { %v129_v34 = vpop.f32.mrb[0].mxu0 }
 0x111   :  { %v131_v35 = vpop.f32.mrb[1].mxu0 }
 0x112   :  { %v133_v36 = vpop.f32.mrb[2].mxu0  ;;  %v170_v38 = vpop.f32.mrb[0].mxu1 }
 0x113   :  { %v134_v37 = vpop.f32.mrb[3].mxu0  ;;  %v528_v39 = vpop.f32.mrb[1].mxu1  ;;  %v450_v9 = vadd.f32 %v448_v5, %v170_v38 }
 0x114   :  { %v173_v40 = vpop.f32.mrb[2].mxu1 }
 0x115   :  { %v529_v41 = vpop.f32.mrb[3].mxu1 }
 0x130   :  { %v371_v48 = vpop.f32.mrb[4].mxu0 }
 0x131   :  { %v418_v49 = vadd.f32 %v371_v48, %v129_v34  ;;  %v373_v50 = vpop.f32.mrb[5].mxu0 }
 0x132   :  { %v419_v51 = vadd.f32 %v373_v50, %v131_v35  ;;  %v375_v53 = vpop.f32.mrb[6].mxu0  ;;  %v412_v58 = vpop.f32.mrb[4].mxu1 }
 0x133   :  { %v431_v54 = vadd.f32 %v424_v47, %v418_v49  ;;  %v376_v55 = vpop.f32.mrb[7].mxu0  ;;  %v548_v60 = vpop.f32.mrb[5].mxu1  ;;  %v456_v7 = vadd.f32 %v454_v3, %v412_v58 }
 0x134   :  { %v432_v57 = vadd.f32 %v428_v52, %v419_v51  ;;  %v415_v61 = vpop.f32.mrb[6].mxu1 }
 0x135   :  { %v511_v56 = vmul.f32 -1.442695, %v431_v54  ;;  %v549_v62 = vpop.f32.mrb[7].mxu1 }
 0x136   :  { %v512_v59 = vmul.f32 -1.442695, %v432_v57 }
 0x137   :  { %595 = vpow2.f32 %v511_v56 }
 0x138   :  { %597 = vpow2.f32 %v512_v59 }
 0x141   :  { %v596_v63 = vpop.eup %595 }
 0x142   :  { %v439_v0 = vadd.f32 1.0, %v596_v63  ;;  %v598_v4 = vpop.eup %597 }
 0x143   :  { %v440_v6 = vadd.f32 1.0, %v598_v4 }
 0x144   :  { %599 = vrcp.f32 %v439_v0 }
 0x145   :  { %601 = vrcp.f32 %v440_v6 }
 0x14e   :  { %v600_v8 = vpop.eup %599 }
 0x14f   :  { %v457_v10 = vmul.f32 %v600_v8, %v456_v7  ;;  %v602_v12 = vpop.eup %601 }
 0x150   :  { %v460_v13 = vsub.f32 1.0, %v602_v12  ;;  %v462_v16 = vmul.f32 %v602_v12, %v795_v29 }
 0x151   :  { %v458_v11 = vadd.f32 %v457_v10, %v450_v9 }
 0x153   :  { %603 = vtanh.f32 %v458_v11 }
 0x15d   :  { %v604_v14 = vpop.eup %603 }
 0x15e   :  { %v461_v15 = vmul.f32 %v604_v14, %v460_v13 }
 0x160   :  { %v463_v17 = vadd.f32 %v462_v16, %v461_v15 }
 0x162   :  { %464 = vst [vmem:[#allocation2] sm:$0x1] %v463_v17  ;;  %465 = vst [vmem:[#allocation9] sm:$0x1] %v463_v17 }
 0x163   :  { %682 = shalt.err (!%p679_p0)
}
 0x164   :  { %s683_s12 = scalar_lea.hbm %s823_s5, 16 }
 0x165   :  { %p684_p1 = scmp.ne.s32.totalorder %s823_s5, %s683_s12  ;;  %p687_p2 = scmp.lt.u32.totalorder %s683_s12, %s823_s5 }
 0x167   :  { %p689_p3 = pnand %p687_p2, %p684_p1 }
 0x169   :  { %692 = shalt.err (!%p689_p3)
}
 0x16a   :  { %475 = dma.vmem_to_hbm [thread:$0]  %s473_s7, 16, %s823_s5, [#allocation5]  }
 0x16b   :  { %697 = dma.done.wait [#allocation5], 16  }
 0x16c   :  { %698 = vsyncadd [#allocation5], 4294967280 }
 0x16d   :  { %479 = vsyncpa [#allocation4], 1 }
 0x16e   :  { %480 = vsyncpa [#allocation7], 1 }
 0x16f   :  { %481 = vsyncpa [#allocation5], 1 }

</bundles_post_ra>
